<compile_context>
chip_gen: v7x
topology: tpu7x:2x2x1
jax: 0.10.0
libtpu: 0.0.40
codegen_flags: <defaults>
</compile_context>

<pallas_src>
import functools

import jax
import jax.numpy as jnp
import numpy as np
from jax.experimental import pallas as pl
from jax.experimental.pallas import tpu as pltpu


# ----------------------------------------------------------------------------
# Kernels
# ----------------------------------------------------------------------------
def _add_pe_broadcast_kernel(x_ref, pe_ref, o_ref):
    # x_ref/o_ref: (B, R, 128); pe_ref: (1, R, 128) -> broadcast over batch.
    o_ref[...] = x_ref[...] + pe_ref[...]


def _add_pe_tiled_kernel(x_ref, pe_ref, o_ref):
    # x_ref/o_ref: (1, TR, 128); pe_ref: (TR, 128) -> broadcast over the 1-dim.
    o_ref[...] = x_ref[...] + pe_ref[...]


# ----------------------------------------------------------------------------
# Lane-dense view helper: flatten per-batch [L, D] -> [R, 128] (pad if needed).
# ----------------------------------------------------------------------------
def _lane_dense_views(x, pe_sliced):
    B, L, D = x.shape
    LD = L * D
    pad = (-LD) % 128
    x_flat = x.reshape(B, LD)
    pe_flat = pe_sliced.reshape(1, LD)
    if pad:
        # Zero-pad the flattened row so every load/store is a full 128-lane op.
        x_flat = jnp.pad(x_flat, ((0, 0), (0, pad)))
        pe_flat = jnp.pad(pe_flat, ((0, 0), (0, pad)))
    R = (LD + pad) // 128
    return x_flat.reshape(B, R, 128), pe_flat.reshape(1, R, 128), R, pad


# ----------------------------------------------------------------------------
# Pallas paths
# ----------------------------------------------------------------------------
def _small_path(x_k, pe_k):
    # Whole problem fits comfortably in VMEM: single invocation, no grid,
    # one DMA in / one DMA out per operand, pe broadcast in-kernel.
    return pl.pallas_call(
        _add_pe_broadcast_kernel,
        out_shape=jax.ShapeDtypeStruct(x_k.shape, x_k.dtype),
        input_output_aliases={0: 0},          # result overwrites x's buffer
    )(x_k, pe_k)


def _tiled_path(x_k, pe_k, row_tile):
    B, R, _ = x_k.shape
    pe2d = pe_k.reshape(R, 128)

    # Row tile: multiple of 8 (sublane constraint), capped so each buffer stays
    # well under 1 MiB -> multi-buffered total fits v7x 64 MiB VMEM and v5e's
    # 16 MiB default scoped limit without raising vmem_limit_bytes.
    tr = min(row_tile, R)
    tr = max(8, (tr // 8) * 8)
    if R < 8:
        tr = R                               # full dim is always a legal block
    num_r = pl.cdiv(R, tr)

    # Grid = (row_tiles, B): B innermost, so pe's block index only changes on
    # the outer axis -> pe is DMA'd once per row tile and reused across batch.
    grid = (num_r, B)
    itemsize = x_k.dtype.itemsize

    return pl.pallas_call(
        _add_pe_tiled_kernel,
        out_shape=jax.ShapeDtypeStruct(x_k.shape, x_k.dtype),
        grid=grid,
        in_specs=[
            pl.BlockSpec((1, tr, 128), lambda r, b: (b, r, 0),
                         pipeline_mode=pl.Buffered(3)),   # extra DMA in flight
            pl.BlockSpec((tr, 128), lambda r, b: (r, 0)),  # pe: reused over B
        ],
        out_specs=pl.BlockSpec((1, tr, 128), lambda r, b: (b, r, 0)),
        input_output_aliases={0: 0},
        compiler_params=pltpu.CompilerParams(
            dimension_semantics=("parallel", "parallel")),  # no reduction axes
        cost_estimate=pl.CostEstimate(
            flops=B * R * 128,
            transcendentals=0,
            bytes_accessed=(2 * B * R * 128 + R * 128) * itemsize),
    )(x_k, pe2d)


# ----------------------------------------------------------------------------
# Public wrapper (forward pass of the module, eval mode).
# ----------------------------------------------------------------------------
def learnable_positional_encoding(x, pe, *, row_tile=1024,
                                  small_bytes_threshold=4 * 1024 * 1024,
                                  min_bytes_for_pallas=0):
    """x: [B, L, D], pe: [1, max_len, D] -> [B, L, D]  (dropout = identity)."""
    B, L, D = x.shape
    assert pe.ndim == 3 and pe.shape[0] == 1 and pe.shape[2] == D
    assert L <= pe.shape[1], "sequence length exceeds max_len"
    # Slice pe to the actual sequence length (identical to the module when
    # L == max_len; generalizes the usual pe[:, :x.size(1)] usage otherwise).
    pe_s = pe[:, :L, :].astype(x.dtype)

    # Tiny arrays: a standalone kernel launch costs more than an XLA-fused add.
    # (Default 0 keeps the Pallas path so this script always exercises it.)
    if x.size * x.dtype.itemsize < min_bytes_for_pallas:
        return x + pe_s

    x_k, pe_k, R, pad = _lane_dense_views(x, pe_s)

    if x_k.size * x_k.dtype.itemsize <= small_bytes_threshold:
        out = _small_path(x_k, pe_k)
    else:
        out = _tiled_path(x_k, pe_k, row_tile)

    out = out.reshape(B, R * 128)
    if pad:
        out = out[:, :L * D]
    return out.reshape(B, L, D)


# ----------------------------------------------------------------------------
# Pure-JAX reference mirroring the PyTorch forward (eval mode).
# ----------------------------------------------------------------------------
def reference(x, pe):
    return x + pe[:, :x.shape[1], :]


if __name__ == "__main__":
    key = jax.random.PRNGKey(0)

    def check(out, x, pe):
        ref = jax.block_until_ready(reference(x, pe))
        np.testing.assert_allclose(np.asarray(out), np.asarray(ref),
                                   rtol=1e-6, atol=1e-6)

    # --- Test 1: small shape -> single-step broadcast path -------------------
    k1, k2, key = jax.random.split(key, 3)
    B, L, D = 2, 64, 32
    x1 = jax.random.normal(k1, (B, L, D), jnp.float32)
    pe1 = jax.random.uniform(k2, (1, L, D), jnp.float32, minval=-0.02, maxval=0.02)
    fn_small = jax.jit(learnable_positional_encoding)
    out1 = jax.block_until_ready(fn_small(x1, pe1))
    check(out1, x1, pe1)

    # --- Test 2: force the tiled (row_tiles, B) production path --------------
    k1, k2, key = jax.random.split(key, 3)
    B, L, D = 2, 1024, 256                       # R = 2048 rows of 128 lanes
    x2 = jax.random.normal(k1, (B, L, D), jnp.float32)
    pe2 = jax.random.uniform(k2, (1, L, D), jnp.float32, minval=-0.02, maxval=0.02)
    fn_tiled = jax.jit(functools.partial(learnable_positional_encoding,
                                         row_tile=512, small_bytes_threshold=0))
    out2 = jax.block_until_ready(fn_tiled(x2, pe2))
    check(out2, x2, pe2)

    # --- Test 3: L*D not a multiple of 128 -> padded lane-dense path ---------
    k1, k2, key = jax.random.split(key, 3)
    B, L, D, max_len = 3, 10, 24, 16             # also exercises pe[:, :L] slice
    x3 = jax.random.normal(k1, (B, L, D), jnp.float32)
    pe3 = jax.random.uniform(k2, (1, max_len, D), jnp.float32,
                             minval=-0.02, maxval=0.02)
    out3 = jax.block_until_ready(fn_small(x3, pe3))
    check(out3, x3, pe3)

    print("KERNEL_OK")
</pallas_src>

<mosaic_0001>
module attributes {stable_mosaic.version = 11 : i64} {
  func.func @_add_pe_broadcast_kernel(%arg0: memref<2x16x128xf32, #tpu.memory_space<vmem>>, %arg1: memref<1x16x128xf32, #tpu.memory_space<vmem>>, %arg2: memref<2x16x128xf32, #tpu.memory_space<vmem>>) attributes {dimension_semantics = [], scalar_prefetch = 0 : i64, scratch_operands = 0 : i64, tpu.core_type = #tpu.core_type<tc>} {
    %c0 = arith.constant 0 : index
    %c0_0 = arith.constant 0 : index
    %c0_1 = arith.constant 0 : index
    %0 = vector.load %arg0[%c0, %c0_0, %c0_1] : memref<2x16x128xf32, #tpu.memory_space<vmem>>, vector<2x16x128xf32>
    %c0_2 = arith.constant 0 : index
    %c0_3 = arith.constant 0 : index
    %c0_4 = arith.constant 0 : index
    %1 = vector.load %arg1[%c0_2, %c0_3, %c0_4] : memref<1x16x128xf32, #tpu.memory_space<vmem>>, vector<1x16x128xf32>
    %2 = vector.broadcast %1 : vector<1x16x128xf32> to vector<2x16x128xf32>
    %3 = arith.addf %0, %2 : vector<2x16x128xf32>
    %c0_5 = arith.constant 0 : index
    %c0_6 = arith.constant 0 : index
    %c0_7 = arith.constant 0 : index
    %4 = vector.load %arg2[%c0_5, %c0_6, %c0_7] : memref<2x16x128xf32, #tpu.memory_space<vmem>>, vector<2x16x128xf32>
    tpu.vector_store %arg2[%c0_5, %c0_6, %c0_7], %3 {strides = array<i32>} : memref<2x16x128xf32, #tpu.memory_space<vmem>>, vector<2x16x128xf32>,
    return
  }
}

</mosaic_0001>

<bundles_post_ra>
// kernel: learnable_positional_encoding.1
= control target key start
LH: loop header
LB: loop body
LE: loop exit
PB: predicated region body
PF: predicated region fallthrough
CT: control target
= control target key end

     0   :  { %s74_s0 = inlined_call_operand.vmem [shape: f32[2,16,128], index: 0, kind: input, shape index: {}, may-alias: {0,2}]   ;;  %s75_s1 = inlined_call_operand.vmem [shape: f32[1,16,128], index: 1, kind: input, shape index: {}]   ;;  %s76_s2 = inlined_call_operand.vmem [shape: f32[2,16,128], index: 2, kind: output, shape index: {}, may-alias: {0,2}]  }
   0x1   :  { %v11_v0 = vld [vmem:[%s74_s0] sm:$0xff]  ;;  %v12_v2 = vld [vmem:[%s74_s0 + $0x8] sm:$0xff]  ;;  %v13_v5 = vld [vmem:[%s74_s0 + $0x10] sm:$0xff] }
   0x2   :  { %v15_v1 = vld [vmem:[%s75_s1] sm:$0xff]  ;;  %v16_v4 = vld [vmem:[%s75_s1 + $0x8] sm:$0xff]  ;;  %v14_v6 = vld [vmem:[%s74_s0 + $0x18] sm:$0xff] }
   0x3   :  { %v17_v3 = vadd.f32 %v15_v1, %v11_v0  ;;  %v18_v7 = vadd.f32 %v16_v4, %v12_v2  ;;  %v19_v8 = vadd.f32 %v15_v1, %v13_v5  ;;  %v20_v9 = vadd.f32 %v16_v4, %v14_v6 }
   0x5   :  { %21 = vst [vmem:[%s76_s2] sm:$0xff] %v17_v3  ;;  %22 = vst [vmem:[%s76_s2 + $0x8] sm:$0xff] %v18_v7 }
   0x6   :  { %23 = vst [vmem:[%s76_s2 + $0x10] sm:$0xff] %v19_v8  ;;  %24 = vst [vmem:[%s76_s2 + $0x18] sm:$0xff] %v20_v9 }

</bundles_post_ra>
